<compile_context>
chip_gen: v7x
topology: tpu7x:2x2x1
jax: 0.10.0
libtpu: 0.0.40
codegen_flags: <defaults>
</compile_context>

<pallas_src>
import functools

import jax
import jax.numpy as jnp
from jax import lax
from jax.experimental import pallas as pl
from jax.experimental.pallas import tpu as pltpu


def _round_up(x, m):
    return ((x + m - 1) // m) * m


def _cdiv(a, b):
    return (a + b - 1) // b


def _vmem_limit_bytes():
    """VMEM budget to request; conservative (64 MiB) fallback if query fails."""
    cap = None
    try:
        info = pltpu.get_tpu_info()
        cap = int(getattr(info, "vmem_capacity_bytes", 0)) or None
    except Exception:
        cap = None
    if cap is None:
        cap = 64 * 1024 * 1024  # assume v7x-sized VMEM unless proven larger
    # ~25% headroom for compiler-internal scratch, never ask for > 96 MiB.
    return min((cap * 3) // 4, 96 * 1024 * 1024)


def _num_tensorcores():
    """Best-effort TensorCores-per-chip (2 on v7x, 1 on v5e/v6e)."""
    try:
        info = pltpu.get_tpu_info()
        for name in ("num_tensorcores", "tensorcore_count", "num_cores",
                     "cores_per_chip", "core_count"):
            v = getattr(info, name, None)
            if isinstance(v, int) and v > 0:
                return v
    except Exception:
        pass
    return 1


def _gram_kernel(a_ref, b_ref, aa_ref, bb_ref, ab_ref):
    """Stream one (n_pad, tk) feature tile of each embedding and accumulate the
    three Gram matrices A.A^T, B.B^T, A.B^T (all (n_pad, n_pad), f32).

    Row norms are not accumulated separately -- they are the Gram diagonals.
    """
    k = pl.program_id(1)

    @pl.when(k == 0)
    def _init():
        aa_ref[...] = jnp.zeros_like(aa_ref)
        bb_ref[...] = jnp.zeros_like(bb_ref)
        ab_ref[...] = jnp.zeros_like(ab_ref)

    a = a_ref[...]
    b = b_ref[...]
    # Contract the feature (lane) axis of both operands: X @ Y^T.
    # TODO(synk): verify with pl.lower_as_mlir that this does not emit a
    # per-tile XLU transpose of the RHS for very large tk; tk is capped at
    # 16384 so any such transpose stays hidden under the HBM DMA stream.
    contract = (((1,), (1,)), ((), ()))
    aa_ref[...] += lax.dot_general(a, a, contract,
                                   preferred_element_type=jnp.float32)
    bb_ref[...] += lax.dot_general(b, b, contract,
                                   preferred_element_type=jnp.float32)
    ab_ref[...] += lax.dot_general(a, b, contract,
                                   preferred_element_type=jnp.float32)


def _mmd_finalize_kernel(aa_ref, bb_ref, ab_ref, out_ref, *, n, n_pad, gamma):
    """Combine per-core partial Grams and finish the MMD loss (O(n^2) work).

    aa/bb/ab_ref : (nsplit, n_pad, n_pad) partial Grams
    out_ref      : (1, 1) scalar loss
    """
    g_aa = jnp.sum(aa_ref[...], axis=0)
    g_bb = jnp.sum(bb_ref[...], axis=0)
    g_ab = jnp.sum(ab_ref[...], axis=0)

    ri = lax.broadcasted_iota(jnp.int32, (n_pad, n_pad), 0)
    ci = lax.broadcasted_iota(jnp.int32, (n_pad, n_pad), 1)
    diag = ri == ci
    valid = (ri < n) & (ci < n)  # mask out zero-padded batch rows/cols

    # Squared row norms come from the Gram diagonals.
    na_r = jnp.sum(jnp.where(diag, g_aa, 0.0), axis=1, keepdims=True)  # (n_pad,1)
    na_c = jnp.sum(jnp.where(diag, g_aa, 0.0), axis=0, keepdims=True)  # (1,n_pad)
    nb_r = jnp.sum(jnp.where(diag, g_bb, 0.0), axis=1, keepdims=True)
    nb_c = jnp.sum(jnp.where(diag, g_bb, 0.0), axis=0, keepdims=True)

    inv_nn = 1.0 / float(n * n)

    def mean_dist(g, norm_r, norm_c):
        # ||x_i - y_j||^2 = ||x_i||^2 + ||y_j||^2 - 2 x_i.y_j ; cdist = sqrt.
        sq = jnp.maximum(norm_r + norm_c - 2.0 * g, 0.0)
        d = jnp.where(valid, jnp.sqrt(sq), 0.0)
        s = jnp.sum(d, axis=1, keepdims=True)
        s = jnp.sum(s, axis=0, keepdims=True)  # (1, 1)
        return s * inv_nn

    ss = mean_dist(g_aa, na_r, na_c)  # mean cdist(A, A)  (diag exactly 0)
    tt = mean_dist(g_bb, nb_r, nb_c)  # mean cdist(B, B)
    st = mean_dist(g_ab, na_r, nb_c)  # mean cdist(A, B)
    # MMD = mean(-g*cdist(A,A)) + mean(-g*cdist(B,B)) - 2*mean(-g*cdist(A,B))
    out_ref[...] = (-gamma) * (ss + tt - 2.0 * st)


def mmd_loss(a, b, gamma=None, stream_dtype=None):
    """Pallas implementation of MMDLoss.forward on (B, D) embeddings."""
    assert a.shape == b.shape, "array shapes are not the same"
    n, d = a.shape
    if gamma is None:
        gamma = 1.0 / d  # matches MMDLoss default: 1 / a.shape[1]

    dtype = jnp.promote_types(a.dtype, b.dtype)
    if dtype.name not in ("float32", "bfloat16"):
        dtype = jnp.dtype(jnp.float32)
    if stream_dtype is not None:
        # Optional bandwidth win (numerics-affecting): stream tiles in a
        # narrower dtype while keeping f32 MXU accumulation.
        dtype = jnp.dtype(stream_dtype)
    a = a.astype(dtype)
    b = b.astype(dtype)
    itemsize = dtype.itemsize

    # Pad the batch axis to the dtype sublane packing (8 rows f32, 16 bf16,
    # 32 int8/fp8) so operand tiles and Gram blocks are fully aligned.
    sub = 8 * max(1, 4 // itemsize)
    n_pad = _round_up(max(n, 1), sub)

    # TODO(synk): very large batch n (>~2k) would need n-axis tiling of both
    # the resident Gram accumulators and the finalize kernel; current design
    # assumes 3 * n_pad^2 f32 fits comfortably in VMEM.

    # --- VMEM-budget + DMA-efficiency aware feature tile --------------------
    vmem_limit = _vmem_limit_bytes()
    # Bytes held in VMEM per feature column: 2 inputs x 2 pipeline buffers.
    per_col = itemsize * (2 * 2 * n_pad)
    fixed = 3 * n_pad * n_pad * 4 * 2        # resident Gram outputs (+slack)
    avail = int(vmem_limit * 0.8) - fixed
    tk_max = max(128, ((avail // max(per_col, 1)) // 128) * 128)
    # Target >= ~2 MiB of input DMA per grid step so per-step overhead hides.
    target_bytes = 2 * 1024 * 1024
    tk_target = _round_up(_cdiv(target_bytes, max(2 * n_pad * itemsize, 1)), 128)
    tk = max(128, min(tk_target, tk_max, 16384, _round_up(d, 128)))

    # --- grid: (core split, feature tiles) ----------------------------------
    kt_total = _cdiv(d, tk)
    # Only split the feature stream across cores on 2-TC parts (v7x).
    nsplit = 2 if (_num_tensorcores() >= 2 and kt_total >= 2) else 1
    kt = _cdiv(kt_total, nsplit)
    d_pad = nsplit * kt * tk

    pad_rows = n_pad - n
    pad_cols = d_pad - d
    if pad_rows or pad_cols:
        # Zero padding does not change the Gram entries or the row norms.
        a = jnp.pad(a, ((0, pad_rows), (0, pad_cols)))
        b = jnp.pad(b, ((0, pad_rows), (0, pad_cols)))

    gram_out = jax.ShapeDtypeStruct((nsplit, n_pad, n_pad), jnp.float32)
    gram_spec = pl.BlockSpec((None, n_pad, n_pad), lambda c, k: (c, 0, 0))
    aa, bb, ab = pl.pallas_call(
        _gram_kernel,
        out_shape=(gram_out, gram_out, gram_out),
        grid_spec=pltpu.PrefetchScalarGridSpec(
            num_scalar_prefetch=0,
            grid=(nsplit, kt),
            in_specs=[
                pl.BlockSpec((n_pad, tk), lambda c, k: (0, c * kt + k)),
                pl.BlockSpec((n_pad, tk), lambda c, k: (0, c * kt + k)),
            ],
            out_specs=(gram_spec, gram_spec, gram_spec),
        ),
        compiler_params=pltpu.CompilerParams(
            dimension_semantics=("parallel", "arbitrary"),
            vmem_limit_bytes=int(vmem_limit),
        ),
        cost_estimate=pl.CostEstimate(
            flops=3 * 2 * n_pad * n_pad * d_pad,
            transcendentals=0,
            bytes_accessed=(2 * n_pad * d_pad * itemsize
                            + 3 * nsplit * n_pad * n_pad * 4),
        ),
    )(a, b)

    fin_kernel = functools.partial(
        _mmd_finalize_kernel, n=n, n_pad=n_pad, gamma=float(gamma))
    fin_in_spec = pl.BlockSpec((nsplit, n_pad, n_pad), lambda i: (0, 0, 0))
    out = pl.pallas_call(
        fin_kernel,
        out_shape=jax.ShapeDtypeStruct((1, 1), jnp.float32),
        grid_spec=pltpu.PrefetchScalarGridSpec(
            num_scalar_prefetch=0,
            grid=(1,),
            in_specs=[fin_in_spec, fin_in_spec, fin_in_spec],
            out_specs=pl.BlockSpec((1, 1), lambda i: (0, 0)),
        ),
        compiler_params=pltpu.CompilerParams(
            dimension_semantics=("arbitrary",)),
    )(aa, bb, ab)
    return out[0, 0]


def alignment_net_forward(x1, x2, s_reduce=False):
    """JAX/Pallas equivalent of AlignmentNet.forward (NCHW inputs)."""
    if s_reduce:
        x1_emb = jnp.nanmean(x1, axis=(2, 3))
        x2_emb = jnp.nanmean(x2, axis=(2, 3))
    else:
        x1_emb = x1.reshape(x1.shape[0], -1)
        x2_emb = x2.reshape(x2.shape[0], -1)
    assert x1_emb.shape == x2_emb.shape, "the embedings are not the same"
    return mmd_loss(x1_emb, x2_emb)


# ---------------- pure-JAX reference for correctness check ----------------
def _ref_mmd(a, b):
    gamma = 1.0 / a.shape[1]

    def cdist(x, y):
        sq = jnp.sum((x[:, None, :] - y[None, :, :]) ** 2, axis=-1)
        return jnp.sqrt(jnp.maximum(sq, 0.0))

    return -gamma * (cdist(a, a).mean() + cdist(b, b).mean()
                     - 2.0 * cdist(a, b).mean())


def _ref_forward(x1, x2, s_reduce=False):
    if s_reduce:
        a = jnp.nanmean(x1, axis=(2, 3))
        b = jnp.nanmean(x2, axis=(2, 3))
    else:
        a = x1.reshape(x1.shape[0], -1)
        b = x2.reshape(x2.shape[0], -1)
    return _ref_mmd(a, b)


if __name__ == "__main__":
    key = jax.random.PRNGKey(0)
    k1, k2 = jax.random.split(key)
    # NCHW inputs, as in the PyTorch module.
    x1 = jax.random.normal(k1, (2, 4, 16, 16), dtype=jnp.float32)
    x2 = jax.random.normal(k2, (2, 4, 16, 16), dtype=jnp.float32) + 0.5

    # s_reduce=False path: D = 4*16*16 = 1024 -> single feature tile.
    loss_flat = jax.block_until_ready(
        alignment_net_forward(x1, x2, s_reduce=False))
    ref_flat = _ref_forward(x1, x2, s_reduce=False)
    assert jnp.allclose(loss_flat, ref_flat, rtol=1e-3, atol=2e-3), (
        loss_flat, ref_flat)

    # s_reduce=True path: D = C = 4, zero-padded to one 128-wide tile.
    loss_red = jax.block_until_ready(
        alignment_net_forward(x1, x2, s_reduce=True))
    ref_red = _ref_forward(x1, x2, s_reduce=True)
    assert jnp.allclose(loss_red, ref_red, rtol=1e-3, atol=2e-3), (
        loss_red, ref_red)

    print("KERNEL_OK")
</pallas_src>

<mosaic_0001>
module attributes {stable_mosaic.version = 11 : i64} {
  func.func @_gram_kernel(%arg0: i32, %arg1: i32, %arg2: memref<8x1024xf32, #tpu.memory_space<vmem>>, %arg3: memref<8x1024xf32, #tpu.memory_space<vmem>>, %arg4: memref<1x8x8xf32, #tpu.memory_space<vmem>>, %arg5: memref<1x8x8xf32, #tpu.memory_space<vmem>>, %arg6: memref<1x8x8xf32, #tpu.memory_space<vmem>>) attributes {dimension_semantics = [#tpu.dimension_semantics<parallel>, #tpu.dimension_semantics<arbitrary>], iteration_bounds = array<i64: 1, 1>, scalar_prefetch = 0 : i64, scratch_operands = 0 : i64, tpu.core_type = #tpu.core_type<tc>, window_params = [{transform_indices = @transform_0, window_bounds = array<i64: 8, 1024>}, {transform_indices = @transform_1, window_bounds = array<i64: 8, 1024>}, {transform_indices = @transform_2, window_bounds = array<i64: 1, 8, 8>}, {transform_indices = @transform_3, window_bounds = array<i64: 1, 8, 8>}, {transform_indices = @transform_4, window_bounds = array<i64: 1, 8, 8>}]} {
    %c0_i32 = arith.constant 0 : i32
    %0 = arith.cmpi eq, %arg1, %c0_i32 : i32
    %1 = arith.extui %0 : i1 to i32
    %c0_i32_0 = arith.constant 0 : i32
    %2 = arith.cmpi ne, %1, %c0_i32_0 : i32
    scf.if %2 {
      %cst_24 = arith.constant 0.000000e+00 : f32
      %26 = vector.broadcast %cst_24 : f32 to vector<8x8xf32>
      %c0_25 = arith.constant 0 : index
      %c0_26 = arith.constant 0 : index
      %c0_27 = arith.constant 0 : index
      %27 = vector.load %arg4[%c0_25, %c0_26, %c0_27] : memref<1x8x8xf32, #tpu.memory_space<vmem>>, vector<1x8x8xf32>
      %28 = vector.shape_cast %27 : vector<1x8x8xf32> to vector<8x8xf32>
      %29 = vector.shape_cast %26 : vector<8x8xf32> to vector<1x8x8xf32>
      tpu.vector_store %arg4[%c0_25, %c0_26, %c0_27], %29 {strides = array<i32>} : memref<1x8x8xf32, #tpu.memory_space<vmem>>, vector<1x8x8xf32>,
      %cst_28 = arith.constant 0.000000e+00 : f32
      %30 = vector.broadcast %cst_28 : f32 to vector<8x8xf32>
      %c0_29 = arith.constant 0 : index
      %c0_30 = arith.constant 0 : index
      %c0_31 = arith.constant 0 : index
      %31 = vector.load %arg5[%c0_29, %c0_30, %c0_31] : memref<1x8x8xf32, #tpu.memory_space<vmem>>, vector<1x8x8xf32>
      %32 = vector.shape_cast %31 : vector<1x8x8xf32> to vector<8x8xf32>
      %33 = vector.shape_cast %30 : vector<8x8xf32> to vector<1x8x8xf32>
      tpu.vector_store %arg5[%c0_29, %c0_30, %c0_31], %33 {strides = array<i32>} : memref<1x8x8xf32, #tpu.memory_space<vmem>>, vector<1x8x8xf32>,
      %cst_32 = arith.constant 0.000000e+00 : f32
      %34 = vector.broadcast %cst_32 : f32 to vector<8x8xf32>
      %c0_33 = arith.constant 0 : index
      %c0_34 = arith.constant 0 : index
      %c0_35 = arith.constant 0 : index
      %35 = vector.load %arg6[%c0_33, %c0_34, %c0_35] : memref<1x8x8xf32, #tpu.memory_space<vmem>>, vector<1x8x8xf32>
      %36 = vector.shape_cast %35 : vector<1x8x8xf32> to vector<8x8xf32>
      %37 = vector.shape_cast %34 : vector<8x8xf32> to vector<1x8x8xf32>
      tpu.vector_store %arg6[%c0_33, %c0_34, %c0_35], %37 {strides = array<i32>} : memref<1x8x8xf32, #tpu.memory_space<vmem>>, vector<1x8x8xf32>,
    } else {
    }
    %c0 = arith.constant 0 : index
    %c0_1 = arith.constant 0 : index
    %3 = vector.load %arg2[%c0, %c0_1] : memref<8x1024xf32, #tpu.memory_space<vmem>>, vector<8x1024xf32>
    %c0_2 = arith.constant 0 : index
    %c0_3 = arith.constant 0 : index
    %4 = vector.load %arg3[%c0_2, %c0_3] : memref<8x1024xf32, #tpu.memory_space<vmem>>, vector<8x1024xf32>
    %c0_4 = arith.constant 0 : index
    %c0_5 = arith.constant 0 : index
    %c0_6 = arith.constant 0 : index
    %5 = vector.load %arg4[%c0_4, %c0_5, %c0_6] : memref<1x8x8xf32, #tpu.memory_space<vmem>>, vector<1x8x8xf32>
    %6 = vector.shape_cast %5 : vector<1x8x8xf32> to vector<8x8xf32>
    %cst = arith.constant dense<0.000000e+00> : vector<8x8xf32>
    %7 = tpu.matmul %3, %3, %cst {dimension_numbers = #tpu.dot_dimension_numbers<[1], [1], [0], [0], [0, 0, 1, 0], [], []>} : vector<8x1024xf32>, vector<8x1024xf32>, vector<8x8xf32> -> vector<8x8xf32>
    %8 = arith.addf %6, %7 : vector<8x8xf32>
    %c0_7 = arith.constant 0 : index
    %c0_8 = arith.constant 0 : index
    %c0_9 = arith.constant 0 : index
    %9 = vector.load %arg4[%c0_7, %c0_8, %c0_9] : memref<1x8x8xf32, #tpu.memory_space<vmem>>, vector<1x8x8xf32>
    %10 = vector.shape_cast %9 : vector<1x8x8xf32> to vector<8x8xf32>
    %11 = vector.shape_cast %8 : vector<8x8xf32> to vector<1x8x8xf32>
    tpu.vector_store %arg4[%c0_7, %c0_8, %c0_9], %11 {strides = array<i32>} : memref<1x8x8xf32, #tpu.memory_space<vmem>>, vector<1x8x8xf32>,
    %c0_10 = arith.constant 0 : index
    %c0_11 = arith.constant 0 : index
    %c0_12 = arith.constant 0 : index
    %12 = vector.load %arg5[%c0_10, %c0_11, %c0_12] : memref<1x8x8xf32, #tpu.memory_space<vmem>>, vector<1x8x8xf32>
    %13 = vector.shape_cast %12 : vector<1x8x8xf32> to vector<8x8xf32>
    %cst_13 = arith.constant dense<0.000000e+00> : vector<8x8xf32>
    %14 = tpu.matmul %4, %4, %cst_13 {dimension_numbers = #tpu.dot_dimension_numbers<[1], [1], [0], [0], [0, 0, 1, 0], [], []>} : vector<8x1024xf32>, vector<8x1024xf32>, vector<8x8xf32> -> vector<8x8xf32>
    %15 = arith.addf %13, %14 : vector<8x8xf32>
    %c0_14 = arith.constant 0 : index
    %c0_15 = arith.constant 0 : index
    %c0_16 = arith.constant 0 : index
    %16 = vector.load %arg5[%c0_14, %c0_15, %c0_16] : memref<1x8x8xf32, #tpu.memory_space<vmem>>, vector<1x8x8xf32>
    %17 = vector.shape_cast %16 : vector<1x8x8xf32> to vector<8x8xf32>
    %18 = vector.shape_cast %15 : vector<8x8xf32> to vector<1x8x8xf32>
    tpu.vector_store %arg5[%c0_14, %c0_15, %c0_16], %18 {strides = array<i32>} : memref<1x8x8xf32, #tpu.memory_space<vmem>>, vector<1x8x8xf32>,
    %c0_17 = arith.constant 0 : index
    %c0_18 = arith.constant 0 : index
    %c0_19 = arith.constant 0 : index
    %19 = vector.load %arg6[%c0_17, %c0_18, %c0_19] : memref<1x8x8xf32, #tpu.memory_space<vmem>>, vector<1x8x8xf32>
    %20 = vector.shape_cast %19 : vector<1x8x8xf32> to vector<8x8xf32>
    %cst_20 = arith.constant dense<0.000000e+00> : vector<8x8xf32>
    %21 = tpu.matmul %3, %4, %cst_20 {dimension_numbers = #tpu.dot_dimension_numbers<[1], [1], [0], [0], [0, 0, 1, 0], [], []>} : vector<8x1024xf32>, vector<8x1024xf32>, vector<8x8xf32> -> vector<8x8xf32>
    %22 = arith.addf %20, %21 : vector<8x8xf32>
    %c0_21 = arith.constant 0 : index
    %c0_22 = arith.constant 0 : index
    %c0_23 = arith.constant 0 : index
    %23 = vector.load %arg6[%c0_21, %c0_22, %c0_23] : memref<1x8x8xf32, #tpu.memory_space<vmem>>, vector<1x8x8xf32>
    %24 = vector.shape_cast %23 : vector<1x8x8xf32> to vector<8x8xf32>
    %25 = vector.shape_cast %22 : vector<8x8xf32> to vector<1x8x8xf32>
    tpu.vector_store %arg6[%c0_21, %c0_22, %c0_23], %25 {strides = array<i32>} : memref<1x8x8xf32, #tpu.memory_space<vmem>>, vector<1x8x8xf32>,
    return
  }
  func.func @transform_0(%arg0: i32, %arg1: i32) -> (i32, i32) {
    %c1_i32 = arith.constant 1 : i32
    %0 = arith.muli %arg0, %c1_i32 : i32
    %1 = arith.addi %0, %arg1 : i32
    %c0_i32 = arith.constant 0 : i32
    %c0_i32_0 = arith.constant 0 : i32
    return %c0_i32, %1 : i32, i32
  }
  func.func @transform_1(%arg0: i32, %arg1: i32) -> (i32, i32) {
    %c1_i32 = arith.constant 1 : i32
    %0 = arith.muli %arg0, %c1_i32 : i32
    %1 = arith.addi %0, %arg1 : i32
    %c0_i32 = arith.constant 0 : i32
    %c0_i32_0 = arith.constant 0 : i32
    return %c0_i32, %1 : i32, i32
  }
  func.func @transform_2(%arg0: i32, %arg1: i32) -> (i32, i32, i32) {
    %c0_i32 = arith.constant 0 : i32
    %c0_i32_0 = arith.constant 0 : i32
    %c0_i32_1 = arith.constant 0 : i32
    return %arg0, %c0_i32, %c0_i32_0 : i32, i32, i32
  }
  func.func @transform_3(%arg0: i32, %arg1: i32) -> (i32, i32, i32) {
    %c0_i32 = arith.constant 0 : i32
    %c0_i32_0 = arith.constant 0 : i32
    %c0_i32_1 = arith.constant 0 : i32
    return %arg0, %c0_i32, %c0_i32_0 : i32, i32, i32
  }
  func.func @transform_4(%arg0: i32, %arg1: i32) -> (i32, i32, i32) {
    %c0_i32 = arith.constant 0 : i32
    %c0_i32_0 = arith.constant 0 : i32
    %c0_i32_1 = arith.constant 0 : i32
    return %arg0, %c0_i32, %c0_i32_0 : i32, i32, i32
  }
}

</mosaic_0001>

<bundles_post_ra>
// kernel: tpu_custom_call.1
= control target key start
LH: loop header
LB: loop body
LE: loop exit
PB: predicated region body
PF: predicated region fallthrough
CT: control target
= control target key end

     0   :  { %10 = vsyncpa [#allocation3], 0  ;;  %s1190_s0 = inlined_call_operand.hbm [shape: f32[8,1024], index: 0, kind: input, shape index: {}]   ;;  %s1191_s1 = inlined_call_operand.hbm [shape: f32[8,1024], index: 1, kind: input, shape index: {}]   ;;  %s1192_s2 = inlined_call_operand.hbm [shape: f32[1,8,8], index: 2, kind: output, shape index: {0}]   ;;  %s1193_s3 = inlined_call_operand.hbm [shape: f32[1,8,8], index: 3, kind: output, shape index: {1}]   ;;  %s1194_s4 = inlined_call_operand.hbm [shape: f32[1,8,8], index: 4, kind: output, shape index: {2}]  }
   0x1   :  { %11 = vsyncpa [#allocation6], 0 }
   0x2   :  { %12 = vsyncpa [#allocation4], 0 }
   0x3   :  { %13 = vsyncpa [#allocation9], 0  ;;  %s1093_s15 = smov [#allocation2]   ;;  %s1094_s17 = smov [#allocation5]  }
   0x4   :  { %s24_s16 = sshll.u32 %s1093_s15, 4  ;;  %s38_s18 = sshll.u32 %s1094_s17, 4  ;;  %s25_s16 = int_to_ptr.vmem [resolvable:$true] %s24_s16  ;;  %s39_s18 = int_to_ptr.vmem [resolvable:$true] %s38_s18 }
   0x5   :  { %s975_s21 = scalar_lea.hbm %s1190_s0, 1024 }
   0x6   :  { %p976_p0 = scmp.ne.s32.totalorder %s1190_s0, %s975_s21  ;;  %p979_p1 = scmp.lt.u32.totalorder %s975_s21, %s1190_s0 }
   0x8   :  { %p981_p2 = pnand %p979_p1, %p976_p0 }
   0xa   :  { %984 = shalt.err (!%p981_p2)
}
   0xb   :  { %s985_s26 = scalar_lea.vmem %s25_s16, 1024  ;;  %p990_p4 = scmp.lt.s32.totalorder %s25_s16, %s25_s16 }
   0xc   :  { %p986_p3 = scmp.ne.s32.totalorder %s25_s16, %s985_s26  ;;  %p991_p5 = scmp.lt.s32.totalorder %s985_s26, %s985_s26 }
   0xe   :  { %p992_p6 = por %p991_p5, %p990_p4 }
  0x10   :  { %p993_p7 = pnand %p992_p6, %p986_p3 }
  0x12   :  { %996 = shalt.err (!%p993_p7)
}
  0x13   :  { %27 = dma.hbm_to_vmem [thread:$0]  %s1190_s0, 1024, %s25_s16, [#allocation3]  }
  0x14   :  { %s997_s5 = scalar_lea.hbm %s1191_s1, 1024 }
  0x15   :  { %p998_p8 = scmp.ne.s32.totalorder %s1191_s1, %s997_s5  ;;  %p1001_p9 = scmp.lt.u32.totalorder %s997_s5, %s1191_s1 }
  0x17   :  { %p1003_p10 = pnand %p1001_p9, %p998_p8 }
  0x19   :  { %1006 = shalt.err (!%p1003_p10)
}
  0x1a   :  { %s1007_s10 = scalar_lea.vmem %s39_s18, 1024  ;;  %p1012_p12 = scmp.lt.s32.totalorder %s39_s18, %s39_s18 }
  0x1b   :  { %p1008_p11 = scmp.ne.s32.totalorder %s39_s18, %s1007_s10  ;;  %p1013_p13 = scmp.lt.s32.totalorder %s1007_s10, %s1007_s10 }
  0x1d   :  { %p1014_p0 = por %p1013_p13, %p1012_p12 }
  0x1f   :  { %p1015_p1 = pnand %p1014_p0, %p1008_p11 }
  0x21   :  { %1018 = shalt.err (!%p1015_p1)
}
  0x22   :  { %41 = dma.hbm_to_vmem [thread:$0]  %s1191_s1, 1024, %s39_s18, [#allocation6]  }
  0x23   :  { %1085 = dma.done.wait [#allocation3], 1024  }
  0x24   :  { %1086 = vsyncadd [#allocation3], 4294966272 }
  0x25   :  { %1087 = dma.done.wait [#allocation6], 1024  }
  0x26   :  { %1088 = vsyncadd [#allocation6], 4294966272  ;;  %v61_v0 = vld [vmem:[#allocation2 + $0x8] sm:$0xff]  ;;  %v60_v1 = vld [vmem:[#allocation2] sm:$0xff]  ;;  %vm56_vm0 = vcmask 64512   ;;  %v1095_v16 = vmov 0.0  }
  0x27   :  { %v63_v2 = vld [vmem:[#allocation2 + $0x18] sm:$0xff]  ;;  %77 = vmatprep.subr.mxu0 %v61_v0  ;;  %v62_v3 = vld [vmem:[#allocation2 + $0x10] sm:$0xff]  ;;  %v65_v4 = vld [vmem:[#allocation2 + $0x28] sm:$0xff]  ;;  %141 = vmatprep.mubr.f32.mxu0 %v61_v0  ;;  %57 = vst.msk [vmem:[#allocation7] sm:$0xff] %vm56_vm0, %v1095_v16  ;;  %s1096_s1 = smov [#allocation7]  }
  0x28   :  { %147 = vmatprep.subr.mxu1 %v63_v2  ;;  %78 = vmatpush1.xpose.msra.mxu0 %v60_v1  ;;  %v67_v5 = vld [vmem:[#allocation2 + $0x38] sm:$0xff]  ;;  %v64_v6 = vld [vmem:[#allocation2 + $0x20] sm:$0xff]  ;;  %v66_v7 = vld [vmem:[#allocation2 + $0x30] sm:$0xff]  ;;  %58 = vst.msk [vmem:[#allocation8] sm:$0xff] %vm56_vm0, %v1095_v16  ;;  %s932_s12 = sshll.u32 %s1096_s1, 4  ;;  %s933_s12 = int_to_ptr.vmem [resolvable:$true] %s932_s12 }
  0x29   :  { %148 = vmatpush1.xpose.msra.mxu1 %v62_v3  ;;  %211 = vmatprep.mubr.f32.mxu1 %v63_v2  ;;  %v69_v8 = vld [vmem:[#allocation5 + $0x8] sm:$0xff]  ;;  %v71_v9 = vld [vmem:[#allocation5 + $0x18] sm:$0xff]  ;;  %v68_v10 = vld [vmem:[#allocation5] sm:$0xff]  ;;  %59 = vst.msk [vmem:[#allocation10] sm:$0xff] %vm56_vm0, %v1095_v16  ;;  %s1019_s13 = scalar_lea.vmem %s933_s12, 128  ;;  %p1024_p3 = scmp.lt.s32.totalorder %s933_s12, %s933_s12 }
  0x2a   :  { %217 = vmatprep.subr.mxu0 %v65_v4  ;;  %287 = vmatprep.subr.mxu1 %v67_v5  ;;  %v70_v11 = vld [vmem:[#allocation5 + $0x10] sm:$0xff]  ;;  %v73_v12 = vld [vmem:[#allocation5 + $0x28] sm:$0xff]  ;;  %v75_v13 = vld [vmem:[#allocation5 + $0x38] sm:$0xff]  ;;  %p1020_p2 = scmp.ne.s32.totalorder %s933_s12, %s1019_s13  ;;  %p1025_p4 = scmp.lt.s32.totalorder %s1019_s13, %s1019_s13 }
  0x2b   :  { %142 = vmatmul.mubr.f32.vlgmr.msra.gmra.mrb[0].mxu0 %v60_v1  ;;  %v72_v14 = vld [vmem:[#allocation5 + $0x20] sm:$0xff]  ;;  %v74_v15 = vld [vmem:[#allocation5 + $0x30] sm:$0xff] }
  0x2c   :  { %212 = vmatmul.mubr.f32.vlgmr.msra.gmra.mrb[0].mxu1 %v62_v3  ;;  %218 = vmatpush1.xpose.msra.mxu0 %v64_v6  ;;  %p1026_p5 = por %p1025_p4, %p1024_p3 }
  0x2d   :  { %288 = vmatpush1.xpose.msra.mxu1 %v66_v7  ;;  %281 = vmatprep.mubr.f32.mxu0 %v65_v4 }
  0x2e   :  { %351 = vmatprep.mubr.f32.mxu1 %v67_v5  ;;  %361 = vmatprep.subr.mxu0 %v69_v8  ;;  %v76_v27 = vld [vmem:[#allocation7] sm:$0xff]  ;;  %p1027_p6 = pnand %p1026_p5, %p1020_p2 }
  0x2f   :  { %431 = vmatprep.subr.mxu1 %v71_v9  ;;  %282 = vmatmul.mubr.f32.vlgmr.msra.gmra.mrb[2].mxu0 %v64_v6 }
  0x30   :  { %352 = vmatmul.mubr.f32.vlgmr.msra.gmra.mrb[2].mxu1 %v66_v7  ;;  %362 = vmatpush1.xpose.msra.mxu0 %v68_v10 }
  0x31   :  { %432 = vmatpush1.xpose.msra.mxu1 %v70_v11  ;;  %425 = vmatprep.mubr.f32.mxu0 %v69_v8 }
  0x32   :  { %495 = vmatprep.mubr.f32.mxu1 %v71_v9  ;;  %501 = vmatprep.subr.mxu0 %v73_v12 }
  0x33   :  { %571 = vmatprep.subr.mxu1 %v75_v13  ;;  %426 = vmatmul.mubr.f32.vlgmr.msra.gmra.mrb[4].mxu0 %v68_v10 }
  0x34   :  { %496 = vmatmul.mubr.f32.vlgmr.msra.gmra.mrb[4].mxu1 %v70_v11  ;;  %502 = vmatpush1.xpose.msra.mxu0 %v72_v14 }
  0x35   :  { %572 = vmatpush1.xpose.msra.mxu1 %v74_v15  ;;  %565 = vmatprep.mubr.f32.mxu0 %v73_v12 }
  0x36   :  { %635 = vmatprep.mubr.f32.mxu1 %v75_v13  ;;  %644 = vmatprep.subr.mxu0 %v69_v8 }
  0x37   :  { %714 = vmatprep.subr.mxu1 %v71_v9  ;;  %566 = vmatmul.mubr.f32.vlgmr.msra.gmra.mrb[6].mxu0 %v72_v14 }
  0x38   :  { %636 = vmatmul.mubr.f32.vlgmr.msra.gmra.mrb[6].mxu1 %v74_v15  ;;  %645 = vmatpush1.xpose.msra.mxu0 %v68_v10 }
  0x39   :  { %715 = vmatpush1.xpose.msra.mxu1 %v70_v11  ;;  %708 = vmatprep.mubr.f32.mxu0 %v61_v0 }
  0x3a   :  { %778 = vmatprep.mubr.f32.mxu1 %v63_v2  ;;  %784 = vmatprep.subr.mxu0 %v73_v12 }
  0x3b   :  { %854 = vmatprep.subr.mxu1 %v75_v13  ;;  %709 = vmatmul.mubr.f32.vlgmr.msra.gmra.mrb[8].mxu0 %v60_v1 }
  0x3c   :  { %779 = vmatmul.mubr.f32.vlgmr.msra.gmra.mrb[8].mxu1 %v62_v3  ;;  %785 = vmatpush1.xpose.msra.mxu0 %v72_v14 }
  0x3d   :  { %848 = vmatprep.mubr.f32.mxu0 %v65_v4  ;;  %855 = vmatpush1.xpose.msra.mxu1 %v74_v15 }
  0x3e   :  { %918 = vmatprep.mubr.f32.mxu1 %v67_v5 }
  0x3f   :  { %849 = vmatmul.mubr.f32.vlgmr.msra.gmra.mrb[10].mxu0 %v64_v6 }
  0x40   :  { %919 = vmatmul.mubr.f32.vlgmr.msra.gmra.mrb[10].mxu1 %v66_v7 }
  0xfe   :  { %v143_v17 = vpop.f32.mrb[0].mxu0 }
  0xff   :  { %v213_v18 = vpop.f32.mrb[0].mxu1  ;;  %v145_v19 = vpop.f32.mrb[1].mxu0 }
 0x100   :  { %v214_v20 = vadd.f32 %v213_v18, %v143_v17  ;;  %v215_v21 = vpop.f32.mrb[1].mxu1 }
 0x102   :  { %v283_v22 = vpop.f32.mrb[2].mxu0 }
 0x103   :  { %v353_v23 = vpop.f32.mrb[2].mxu1  ;;  %v284_v24 = vadd.f32 %v283_v22, %v214_v20  ;;  %v285_v25 = vpop.f32.mrb[3].mxu0 }
 0x104   :  { %v355_v26 = vpop.f32.mrb[3].mxu1 }
 0x105   :  { %v354_v28 = vadd.f32 %v353_v23, %v284_v24 }
 0x106   :  { %v427_v29 = vpop.f32.mrb[4].mxu0 }
 0x107   :  { %v497_v30 = vpop.f32.mrb[4].mxu1  ;;  %v357_v31 = vadd.f32 %v354_v28, %v76_v27  ;;  %v429_v32 = vpop.f32.mrb[5].mxu0 }
 0x108   :  { %v498_v33 = vadd.f32 %v497_v30, %v427_v29  ;;  %v499_v34 = vpop.f32.mrb[5].mxu1 }
 0x109   :  { %359 = vst.msk [vmem:[#allocation7] sm:$0xff] %vm56_vm0, %v357_v31 }
 0x10a   :  { %v567_v35 = vpop.f32.mrb[6].mxu0 }
 0x10b   :  { %v637_v36 = vpop.f32.mrb[6].mxu1 }
 0x10c   :  { %1030 = shalt.err (!%p1027_p6)
}
 0x10d   :  { %s1031_s16 = scalar_lea.hbm %s1192_s2, 128 }
 0x10e   :  { %p1032_p7 = scmp.ne.s32.totalorder %s1192_s2, %s1031_s16  ;;  %p1035_p8 = scmp.lt.u32.totalorder %s1031_s16, %s1192_s2 }
 0x110   :  { %p1037_p9 = pnand %p1035_p8, %p1032_p7 }
 0x112   :  { %1040 = shalt.err (!%p1037_p9)
}
 0x113   :  { %935 = dma.vmem_to_hbm [thread:$0]  %s933_s12, 128, %s1192_s2, [#allocation4]   ;;  %v568_v37 = vadd.f32 %v567_v35, %v498_v33  ;;  %v569_v38 = vpop.f32.mrb[7].mxu0  ;;  %v639_v39 = vpop.f32.mrb[7].mxu1  ;;  %v360_v40 = vld [vmem:[#allocation8] sm:$0xff] }
 0x114   :  { %s1097_s23 = smov [#allocation8]   ;;  %v710_v42 = vpop.f32.mrb[8].mxu0  ;;  %v780_v43 = vpop.f32.mrb[8].mxu1 }
 0x115   :  { %s942_s24 = sshll.u32 %s1097_s23, 4  ;;  %v638_v41 = vadd.f32 %v637_v36, %v568_v37  ;;  %v712_v45 = vpop.f32.mrb[9].mxu0  ;;  %v781_v46 = vadd.f32 %v780_v43, %v710_v42  ;;  %v782_v47 = vpop.f32.mrb[9].mxu1  ;;  %s943_s24 = int_to_ptr.vmem [resolvable:$true] %s942_s24 }
 0x116   :  { %v850_v48 = vpop.f32.mrb[10].mxu0  ;;  %s1041_s25 = scalar_lea.vmem %s943_s24, 128  ;;  %p1046_p11 = scmp.lt.s32.totalorder %s943_s24, %s943_s24 }
 0x117   :  { %v641_v44 = vadd.f32 %v638_v41, %v360_v40  ;;  %p1042_p10 = scmp.ne.s32.totalorder %s943_s24, %s1041_s25  ;;  %p1047_p12 = scmp.lt.s32.totalorder %s1041_s25, %s1041_s25 }
 0x119   :  { %642 = vst.msk [vmem:[#allocation8] sm:$0xff] %vm56_vm0, %v641_v44  ;;  %p1048_p13 = por %p1047_p12, %p1046_p11 }
 0x11b   :  { %p1049_p0 = pnand %p1048_p13, %p1042_p10 }
 0x11d   :  { %1052 = shalt.err (!%p1049_p0)
}
 0x11e   :  { %s1053_s27 = scalar_lea.hbm %s1193_s3, 128 }
 0x11f   :  { %p1054_p1 = scmp.ne.s32.totalorder %s1193_s3, %s1053_s27  ;;  %p1057_p2 = scmp.lt.u32.totalorder %s1053_s27, %s1193_s3 }
 0x121   :  { %p1059_p3 = pnand %p1057_p2, %p1054_p1 }
 0x123   :  { %1062 = shalt.err (!%p1059_p3)
}
 0x124   :  { %945 = dma.vmem_to_hbm [thread:$0]  %s943_s24, 128, %s1193_s3, [#allocation9]   ;;  %v851_v49 = vadd.f32 %v850_v48, %v781_v46  ;;  %v852_v50 = vpop.f32.mrb[11].mxu0  ;;  %v920_v51 = vpop.f32.mrb[10].mxu1  ;;  %v643_v52 = vld [vmem:[#allocation10] sm:$0xff] }
 0x125   :  { %v922_v53 = vpop.f32.mrb[11].mxu1  ;;  %s1098_s8 = smov [#allocation10]  }
 0x126   :  { %s952_s9 = sshll.u32 %s1098_s8, 4  ;;  %v921_v54 = vadd.f32 %v920_v51, %v851_v49  ;;  %s953_s9 = int_to_ptr.vmem [resolvable:$true] %s952_s9 }
 0x127   :  { %s1063_s10 = scalar_lea.vmem %s953_s9, 128  ;;  %p1068_p5 = scmp.lt.s32.totalorder %s953_s9, %s953_s9 }
 0x128   :  { %v924_v55 = vadd.f32 %v921_v54, %v643_v52  ;;  %p1064_p4 = scmp.ne.s32.totalorder %s953_s9, %s1063_s10  ;;  %p1069_p6 = scmp.lt.s32.totalorder %s1063_s10, %s1063_s10 }
 0x12a   :  { %925 = vst.msk [vmem:[#allocation10] sm:$0xff] %vm56_vm0, %v924_v55  ;;  %p1070_p7 = por %p1069_p6, %p1068_p5 }
 0x12c   :  { %p1071_p8 = pnand %p1070_p7, %p1064_p4 }
 0x12e   :  { %1074 = shalt.err (!%p1071_p8)
}
 0x12f   :  { %s1075_s11 = scalar_lea.hbm %s1194_s4, 128 }
 0x130   :  { %p1076_p9 = scmp.ne.s32.totalorder %s1194_s4, %s1075_s11  ;;  %p1079_p10 = scmp.lt.u32.totalorder %s1075_s11, %s1194_s4 }
 0x132   :  { %p1081_p11 = pnand %p1079_p10, %p1076_p9 }
 0x134   :  { %1084 = shalt.err (!%p1081_p11)
}
 0x135   :  { %955 = dma.vmem_to_hbm [thread:$0]  %s953_s9, 128, %s1194_s4, [#allocation9]  }
 0x136   :  { %1089 = dma.done.wait [#allocation4], 128  }
 0x137   :  { %1090 = vsyncadd [#allocation4], 4294967168 }
 0x138   :  { %1091 = dma.done.wait [#allocation9], 256  }
 0x139   :  { %1092 = vsyncadd [#allocation9], 4294967040 }
 0x13a   :  { %965 = vsyncpa [#allocation3], 1 }
 0x13b   :  { %966 = vsyncpa [#allocation6], 1 }
 0x13c   :  { %967 = vsyncpa [#allocation4], 1 }
 0x13d   :  { %968 = vsyncpa [#allocation9], 1 }

</bundles_post_ra>
